<compile_context>
chip_gen: v7x
topology: tpu7x:2x2x1
jax: 0.10.0
libtpu: 0.0.40
codegen_flags: <defaults>
</compile_context>

<pallas_src>
import jax
import jax.numpy as jnp
from jax.experimental import pallas as pl
from jax.experimental.pallas import tpu as pltpu


def mlp_kernel(x_ref, w1_ref, b1_ref, w2_ref, b2_ref, o_ref):
    # fc1: [TB, F] @ [F, Hp] + [1, Hp]
    h = jnp.dot(x_ref[...], w1_ref[...], preferred_element_type=jnp.float32)
    h = h + b1_ref[...]
    # ReLU
    h = jnp.maximum(h, 0.0)
    # fc2: [TB, Hp] @ [Hp, Cp] + [1, Cp]   (lane-dense output tile)
    out = jnp.dot(h, w2_ref[...], preferred_element_type=jnp.float32)
    out = out + b2_ref[...]
    o_ref[...] = out.astype(o_ref.dtype)


def _round_up(n, m):
    return m * pl.cdiv(n, m)


def simple_nn_forward(x, w1, b1, w2, b2, *, block_b=256):
    """x: [B, F] f32.  w1: [F, H], b1: [1, H], w2: [H, C], b2: [1, C] (logical shapes)."""
    B, F = x.shape
    H = w1.shape[1]
    C = w2.shape[1]

    # Lane-dense padding of the hidden and class dims (exact: zeros contribute 0).
    Hp = _round_up(H, 128)
    Cp = _round_up(C, 128)
    w1p = jnp.zeros((F, Hp), jnp.float32).at[:, :H].set(w1)
    b1p = jnp.zeros((1, Hp), jnp.float32).at[:, :H].set(b1)
    w2p = jnp.zeros((Hp, Cp), jnp.float32).at[:H, :C].set(w2)
    b2p = jnp.zeros((1, Cp), jnp.float32).at[:, :C].set(b2)

    # Pad the batch up to a multiple of the batch tile (extra rows sliced off below).
    Bp = _round_up(B, block_b)
    xp = x if Bp == B else jnp.zeros((Bp, F), x.dtype).at[:B, :].set(x)

    grid = (Bp // block_b,)
    vmem = pltpu.MemorySpace.VMEM

    # Weights / biases: full blocks, constant index_map -> resident in VMEM
    # across all batch tiles (DMA'd once per call, not per tile).
    resident = lambda a: pl.BlockSpec(a.shape, lambda i: (0, 0), memory_space=vmem)

    out = pl.pallas_call(
        mlp_kernel,
        out_shape=jax.ShapeDtypeStruct((Bp, Cp), jnp.float32),
        grid_spec=pltpu.PrefetchScalarGridSpec(
            num_scalar_prefetch=0,
            grid=grid,
            in_specs=[
                pl.BlockSpec((block_b, F), lambda i: (i, 0), memory_space=vmem),
                resident(w1p),
                resident(b1p),
                resident(w2p),
                resident(b2p),
            ],
            out_specs=pl.BlockSpec((block_b, Cp), lambda i: (i, 0), memory_space=vmem),
        ),
        compiler_params=pltpu.CompilerParams(
            dimension_semantics=("parallel",),  # v7x: 2 TCs split the batch grid
        ),
    )(xp, w1p, b1p, w2p, b2p)

    # Strip batch padding and lane padding of the class dim.
    return out[:B, :C]


def init_params(key, input_size, hidden_size, num_classes):
    """Deterministic init mimicking nn.Linear's uniform(-1/sqrt(fan_in), 1/sqrt(fan_in))."""
    k1, k2, k3, k4 = jax.random.split(key, 4)
    bound1 = 1.0 / jnp.sqrt(jnp.float32(input_size))
    bound2 = 1.0 / jnp.sqrt(jnp.float32(hidden_size))
    # stored transposed relative to PyTorch: [in, out]
    w1 = jax.random.uniform(k1, (input_size, hidden_size), jnp.float32, -bound1, bound1)
    b1 = jax.random.uniform(k2, (1, hidden_size), jnp.float32, -bound1, bound1)
    w2 = jax.random.uniform(k3, (hidden_size, num_classes), jnp.float32, -bound2, bound2)
    b2 = jax.random.uniform(k4, (1, num_classes), jnp.float32, -bound2, bound2)
    return w1, b1, w2, b2


if __name__ == "__main__":
    input_size = 16   # X_train.shape[1] stand-in
    hidden_size = 10
    num_classes = 2
    batch = 1000      # not a multiple of the 256-row tile -> exercises batch padding

    key = jax.random.PRNGKey(0)
    kx, kp = jax.random.split(key)
    x = jax.random.normal(kx, (batch, input_size), dtype=jnp.float32)
    w1, b1, w2, b2 = init_params(kp, input_size, hidden_size, num_classes)

    out = simple_nn_forward(x, w1, b1, w2, b2, block_b=256)
    out = jax.block_until_ready(out)

    # Pure-JAX reference check (unpadded math)
    ref = jnp.maximum(x @ w1 + b1, 0.0) @ w2 + b2
    assert out.shape == (batch, num_classes), out.shape
    assert jnp.allclose(out, ref, atol=1e-5, rtol=1e-5)

    print("KERNEL_OK")
</pallas_src>

<mosaic_0001>
module attributes {stable_mosaic.version = 11 : i64} {
  func.func @mlp_kernel(%arg0: i32, %arg1: memref<256x16xf32, #tpu.memory_space<vmem>>, %arg2: memref<16x128xf32, #tpu.memory_space<vmem>>, %arg3: memref<1x128xf32, #tpu.memory_space<vmem>>, %arg4: memref<128x128xf32, #tpu.memory_space<vmem>>, %arg5: memref<1x128xf32, #tpu.memory_space<vmem>>, %arg6: memref<256x128xf32, #tpu.memory_space<vmem>>) attributes {dimension_semantics = [#tpu.dimension_semantics<parallel>], iteration_bounds = array<i64: 4>, scalar_prefetch = 0 : i64, scratch_operands = 0 : i64, tpu.core_type = #tpu.core_type<tc>, window_params = [{transform_indices = @transform_0, window_bounds = array<i64: 256, 16>}, {pipeline_mode = #tpu.pipeline_mode<synchronous>, transform_indices = @transform_1, window_bounds = array<i64: 16, 128>}, {pipeline_mode = #tpu.pipeline_mode<synchronous>, transform_indices = @transform_2, window_bounds = array<i64: 1, 128>}, {pipeline_mode = #tpu.pipeline_mode<synchronous>, transform_indices = @transform_3, window_bounds = array<i64: 128, 128>}, {pipeline_mode = #tpu.pipeline_mode<synchronous>, transform_indices = @transform_4, window_bounds = array<i64: 1, 128>}, {transform_indices = @transform_5, window_bounds = array<i64: 256, 128>}]} {
    %c0 = arith.constant 0 : index
    %c0_0 = arith.constant 0 : index
    %0 = vector.load %arg1[%c0, %c0_0] : memref<256x16xf32, #tpu.memory_space<vmem>>, vector<256x16xf32>
    %c0_1 = arith.constant 0 : index
    %c0_2 = arith.constant 0 : index
    %1 = vector.load %arg2[%c0_1, %c0_2] : memref<16x128xf32, #tpu.memory_space<vmem>>, vector<16x128xf32>
    %cst = arith.constant dense<0.000000e+00> : vector<256x128xf32>
    %2 = tpu.matmul %0, %1, %cst {dimension_numbers = #tpu.dot_dimension_numbers<[1], [0], [0], [1], [0, 0, 1, 1], [], []>} : vector<256x16xf32>, vector<16x128xf32>, vector<256x128xf32> -> vector<256x128xf32>
    %c0_3 = arith.constant 0 : index
    %c0_4 = arith.constant 0 : index
    %3 = vector.load %arg3[%c0_3, %c0_4] : memref<1x128xf32, #tpu.memory_space<vmem>>, vector<1x128xf32>
    %4 = vector.broadcast %3 : vector<1x128xf32> to vector<256x128xf32>
    %5 = arith.addf %2, %4 : vector<256x128xf32>
    %cst_5 = arith.constant 0.000000e+00 : f32
    %6 = vector.broadcast %cst_5 : f32 to vector<256x128xf32>
    %7 = arith.maximumf %5, %6 : vector<256x128xf32>
    %c0_6 = arith.constant 0 : index
    %c0_7 = arith.constant 0 : index
    %8 = vector.load %arg4[%c0_6, %c0_7] : memref<128x128xf32, #tpu.memory_space<vmem>>, vector<128x128xf32>
    %cst_8 = arith.constant dense<0.000000e+00> : vector<256x128xf32>
    %9 = tpu.matmul %7, %8, %cst_8 {dimension_numbers = #tpu.dot_dimension_numbers<[1], [0], [0], [1], [0, 0, 1, 1], [], []>} : vector<256x128xf32>, vector<128x128xf32>, vector<256x128xf32> -> vector<256x128xf32>
    %c0_9 = arith.constant 0 : index
    %c0_10 = arith.constant 0 : index
    %10 = vector.load %arg5[%c0_9, %c0_10] : memref<1x128xf32, #tpu.memory_space<vmem>>, vector<1x128xf32>
    %11 = vector.broadcast %10 : vector<1x128xf32> to vector<256x128xf32>
    %12 = arith.addf %9, %11 : vector<256x128xf32>
    %c0_11 = arith.constant 0 : index
    %c0_12 = arith.constant 0 : index
    %13 = vector.load %arg6[%c0_11, %c0_12] : memref<256x128xf32, #tpu.memory_space<vmem>>, vector<256x128xf32>
    tpu.vector_store %arg6[%c0_11, %c0_12], %12 {strides = array<i32>} : memref<256x128xf32, #tpu.memory_space<vmem>>, vector<256x128xf32>,
    return
  }
  func.func @transform_0(%arg0: i32) -> (i32, i32) {
    %c0_i32 = arith.constant 0 : i32
    %c0_i32_0 = arith.constant 0 : i32
    return %arg0, %c0_i32 : i32, i32
  }
  func.func @transform_1(%arg0: i32) -> (i32, i32) {
    %c0_i32 = arith.constant 0 : i32
    %c0_i32_0 = arith.constant 0 : i32
    %c0_i32_1 = arith.constant 0 : i32
    return %c0_i32, %c0_i32_0 : i32, i32
  }
  func.func @transform_2(%arg0: i32) -> (i32, i32) {
    %c0_i32 = arith.constant 0 : i32
    %c0_i32_0 = arith.constant 0 : i32
    %c0_i32_1 = arith.constant 0 : i32
    return %c0_i32, %c0_i32_0 : i32, i32
  }
  func.func @transform_3(%arg0: i32) -> (i32, i32) {
    %c0_i32 = arith.constant 0 : i32
    %c0_i32_0 = arith.constant 0 : i32
    %c0_i32_1 = arith.constant 0 : i32
    return %c0_i32, %c0_i32_0 : i32, i32
  }
  func.func @transform_4(%arg0: i32) -> (i32, i32) {
    %c0_i32 = arith.constant 0 : i32
    %c0_i32_0 = arith.constant 0 : i32
    %c0_i32_1 = arith.constant 0 : i32
    return %c0_i32, %c0_i32_0 : i32, i32
  }
  func.func @transform_5(%arg0: i32) -> (i32, i32) {
    %c0_i32 = arith.constant 0 : i32
    %c0_i32_0 = arith.constant 0 : i32
    return %arg0, %c0_i32 : i32, i32
  }
}

</mosaic_0001>

<bundles_post_ra>
// kernel: tpu_custom_call.1
= control target key start
LH: loop header
LB: loop body
LE: loop exit
PB: predicated region body
PF: predicated region fallthrough
CT: control target
= control target key end

     0   :  { %10 = vsyncpa [#allocation3], 0  ;;  %s1763_s0 = inlined_call_operand.vmem [shape: f32[1024,16], index: 0, kind: input, shape index: {}]   ;;  %s1764_s1 = inlined_call_operand.vmem [shape: f32[16,128], index: 1, kind: input, shape index: {}]   ;;  %s1765_s2 = inlined_call_operand.vmem [shape: f32[1,128], index: 2, kind: input, shape index: {}]   ;;  %s1766_s3 = inlined_call_operand.vmem [shape: f32[128,128], index: 3, kind: input, shape index: {}]   ;;  %s1767_s4 = inlined_call_operand.vmem [shape: f32[1,128], index: 4, kind: input, shape index: {}]   ;;  %s1768_s5 = inlined_call_operand.hbm [shape: f32[1024,128], index: 5, kind: output, shape index: {}]  }
   0x1   :  { %12 = vsyncpa [#allocation3 + $0x1], 0  ;;  %s1428_s18 = smov 0   ;;  %s1430_s19 = smov 0  }
   0x2   :  { %s1432_s20 = smov 0   ;;  %s1434_s21 = smov 0  }
   0x3 LB: > { %s1449_s22 = sadd.s32 4294967295, %s1393_s21   ;;  %s977_s23 = sadd.s32 4294967294, %s1393_s21   ;;  %s1393_s21 = sphi %s1434_s21, %s1774_s21   ;;  %s1389_s20 = sphi %s1432_s20, %s1773_s20   ;;  %s1385_s19 = sphi %s1430_s19, %s1772_s19   ;;  %s1381_s18 = sphi %s1428_s18, %s1771_s18  }
   0x4   : > { %s1453_s24 = sadd.s32 1, %s1393_s21   ;;  %s135_s25 = sadd.s32 1, %s1389_s20 }
   0x5   : > { %s132_s26 = ssub.s32 %s1393_s21, %s1453_s24  ;;  %p145_p0 = scmp.ne.s32.totalorder %s1389_s20, %s1385_s19 }
   0x6   : > { %p133_p1 = scmp.eq.s32.totalorder %s132_s26, 0  ;;  %p146_p2 = scmp.eq.s32.totalorder %s1449_s22, 3 }
   0x7   : > { %p151_p3 = scmp.ne.s32.totalorder %s1385_s19, %s1381_s18  ;;  %p152_p4 = scmp.eq.s32.totalorder %s977_s23, 3 }
   0x8   : > { %s1464_s27 = scalar_select %p133_p1, %s1389_s20, %s135_s25  }
   0x9   : > { %p1466_p5 = por %p146_p2, %p145_p0  ;;  %p1470_p6 = por %p152_p4, %p151_p3 }
   0xa   : > { %p980_p7 = scmp.ge.s32.totalorder %s1393_s21, 1  ;;  %p191_p8 = scmp.lt.s32.totalorder %s1393_s21, 5 }
   0xc   : > { %p192_p9 = pnand %p980_p7, %p191_p8 }
   0xd   : > { %v258_v0 = vld [vmem:[%s1764_s1] sm:$0xff] (!%p192_p9)  ;;  %v259_v1 = vld [vmem:[%s1764_s1 + $0x8] sm:$0xff] (!%p192_p9)  ;;  %s982_s9 = sshll.u32 (!%p192_p9), %s1449_s22, 5  ;;  %v623_v5 = vld [vmem:[%s1766_s3 + $0x10] sm:$0xff] (!%p192_p9)  ;;  %vm267_vm0 = vcmask (!%p192_p9), 130048   ;;  %s1023_s6 = sshll.u32 (!%p192_p9), %s1449_s22, 12 }
   0xe   : > { %195 = sbr.rel (%p192_p9) target bundleno = 534 (0x216), region = 40  ;;  %v621_v2 = vld [vmem:[%s1766_s3] sm:$0xff] (!%p192_p9)  ;;  %v1238_v3 = vpack.c.bf16 (!%p192_p9), %v259_v1, %v258_v0  ;;  %p220_p10 = scmp.lt.s32.totalorder (!%p192_p9), %s982_s9, 127  ;;  %v622_v4 = vld [vmem:[%s1766_s3 + $0x8] sm:$0xff] (!%p192_p9)  ;;  %v624_v6 = vld [vmem:[%s1766_s3 + $0x18] sm:$0xff] (!%p192_p9) }
   0xf   : > { %v1242_v7 = vpack.c.bf16 (!%p192_p9), %v622_v4, %v621_v2  ;;  %v1246_v8 = vpack.c.bf16 (!%p192_p9), %v624_v6, %v623_v5  ;;  %v625_v9 = vld [vmem:[%s1766_s3 + $0x20] sm:$0xff] (!%p192_p9)  ;;  %v626_v10 = vld [vmem:[%s1766_s3 + $0x28] sm:$0xff] (!%p192_p9)  ;;  %v627_v16 = vld [vmem:[%s1766_s3 + $0x30] sm:$0xff] (!%p192_p9)  ;;  %s1395_s12 = smov (!%p192_p9), [#allocation2]  }
  0x10   : > { %1239 = vmatprep.subr.bf16.mxu0 (!%p192_p9), %v1238_v3  ;;  %v1250_v14 = vpack.c.bf16 (!%p192_p9), %v626_v10, %v625_v9  ;;  %v628_v17 = vld [vmem:[%s1766_s3 + $0x38] sm:$0xff] (!%p192_p9)  ;;  %v629_v21 = vld [vmem:[%s1766_s3 + $0x40] sm:$0xff] (!%p192_p9)  ;;  %v630_v22 = vld [vmem:[%s1766_s3 + $0x48] sm:$0xff] (!%p192_p9)  ;;  %s1335_s13 = sshll.u32 (!%p192_p9), %s1395_s12, 4  ;;  %s1336_s13 = int_to_ptr.vmem [resolvable:$false] %s1335_s13 }
  0x11   : > { %1241 = vmatpush3.bf16.msra.mxu0 (!%p192_p9), %v1238_v3  ;;  %1274 = vmatprep.subr.bf16.mxu1 (!%p192_p9), %v1242_v7  ;;  %v1254_v19 = vpack.c.bf16 (!%p192_p9), %v628_v17, %v627_v16  ;;  %v1258_v24 = vpack.c.bf16 (!%p192_p9), %v630_v22, %v629_v21  ;;  %v631_v26 = vld [vmem:[%s1766_s3 + $0x50] sm:$0xff] (!%p192_p9)  ;;  %v632_v27 = vld [vmem:[%s1766_s3 + $0x58] sm:$0xff] (!%p192_p9)  ;;  %v633_v31 = vld [vmem:[%s1766_s3 + $0x60] sm:$0xff] (!%p192_p9)  ;;  %s1337_s14 = scalar_lea.vmem (!%p192_p9), %s1336_s13, 8192 }
  0x12   : > { %1243 = vmatprep.subr.bf16.mxu0 (!%p192_p9), %v1242_v7  ;;  %1282 = vmatpush3.bf16.msra.mxu1 (!%p192_p9), %v1242_v7  ;;  %v1262_v29 = vpack.c.bf16 (!%p192_p9), %v632_v27, %v631_v26  ;;  %v634_v32 = vld [vmem:[%s1766_s3 + $0x68] sm:$0xff] (!%p192_p9)  ;;  %v635_v56 = vld [vmem:[%s1766_s3 + $0x70] sm:$0xff] (!%p192_p9)  ;;  %v636_v57 = vld [vmem:[%s1766_s3 + $0x78] sm:$0xff] (!%p192_p9) }
  0x13   : > { %1275 = vmatprep.subr.bf16.mxu1 (!%p192_p9), %v1246_v8  ;;  %v1266_v34 = vpack.c.bf16 (!%p192_p9), %v634_v32, %v633_v31  ;;  %v1270_v58 = vpack.c.bf16 (!%p192_p9), %v636_v57, %v635_v56  ;;  %v1603_v59 = vld [vmem:[%s1765_s2] ss:$0 sm:$0xff] (!%p192_p9) }
  0x15   : > { %s1776_s9 = smov (!%p220_p10, %s982_s9), 127 }
  0x16   : > { %s983_s23 = sshll.u32 %s1776_s9, 3  ;;  %1283 = vmatpush3.bf16.msra.mxu1 %v1246_v8  ;;  %s1713_s9 = scalar_lea.hbm %s1768_s5, %s1023_s6 }
  0x17   : > { %s1498_s30 = scalar_lea.vmem %s1763_s0, %s983_s23  ;;  %1276 = vmatprep.subr.bf16.mxu1 %v1250_v14 }
  0x18   : > { %v226_v11 = vld [vmem:[%s1498_s30] sm:$0xff]  ;;  %v227_v12 = vld [vmem:[%s1498_s30 + $0x8] sm:$0xff]  ;;  %v228_v13 = vld [vmem:[%s1498_s30 + $0x10] sm:$0xff] }
  0x19   : > { %1110 = vmatprep.mubr.msk.f32.mxu0 %vm267_vm0, %v226_v11  ;;  %v229_v15 = vld [vmem:[%s1498_s30 + $0x18] sm:$0xff]  ;;  %v230_v18 = vld [vmem:[%s1498_s30 + $0x20] sm:$0xff]  ;;  %v231_v20 = vld [vmem:[%s1498_s30 + $0x28] sm:$0xff] }
  0x1a   : > { %1111 = vmatmul.mubr.msk.f32.vlgmr.msra.gmra.mrb[0].mxu0 %vm267_vm0, %v227_v12  ;;  %1284 = vmatpush3.bf16.msra.mxu1 %v1250_v14  ;;  %v232_v23 = vld [vmem:[%s1498_s30 + $0x30] sm:$0xff]  ;;  %v233_v25 = vld [vmem:[%s1498_s30 + $0x38] sm:$0xff]  ;;  %v234_v28 = vld [vmem:[%s1498_s30 + $0x40] sm:$0xff] }
  0x1b   : > { %1113 = vmatprep.mubr.msk.f32.mxu0 %vm267_vm0, %v228_v13  ;;  %1245 = vmatpush3.bf16.msra.mxu0 %v1242_v7  ;;  %v235_v30 = vld [vmem:[%s1498_s30 + $0x48] sm:$0xff]  ;;  %v236_v33 = vld [vmem:[%s1498_s30 + $0x50] sm:$0xff]  ;;  %v237_v35 = vld [vmem:[%s1498_s30 + $0x58] sm:$0xff] }
  0x1c   : > { %1247 = vmatprep.subr.bf16.mxu0 %v1246_v8  ;;  %1277 = vmatprep.subr.bf16.mxu1 %v1254_v19  ;;  %v238_v36 = vld [vmem:[%s1498_s30 + $0x60] sm:$0xff]  ;;  %v239_v37 = vld [vmem:[%s1498_s30 + $0x68] sm:$0xff]  ;;  %v240_v38 = vld [vmem:[%s1498_s30 + $0x70] sm:$0xff] }
  0x1d   : > { %v241_v39 = vld [vmem:[%s1498_s30 + $0x78] sm:$0xff]  ;;  %v242_v40 = vld [vmem:[%s1498_s30 + $0x80] sm:$0xff]  ;;  %v243_v41 = vld [vmem:[%s1498_s30 + $0x88] sm:$0xff] }
  0x1e   : > { %1114 = vmatmul.mubr.msk.f32.gmra.mrb[2].mxu0 %vm267_vm0, %v229_v15  ;;  %1285 = vmatpush3.bf16.msra.mxu1 %v1254_v19  ;;  %v244_v42 = vld [vmem:[%s1498_s30 + $0x90] sm:$0xff]  ;;  %v245_v43 = vld [vmem:[%s1498_s30 + $0x98] sm:$0xff]  ;;  %v246_v44 = vld [vmem:[%s1498_s30 + $0xa0] sm:$0xff] }
  0x1f   : > { %1116 = vmatprep.mubr.msk.f32.mxu0 %vm267_vm0, %v230_v18  ;;  %1249 = vmatpush3.bf16.msra.mxu0 %v1246_v8  ;;  %v247_v45 = vld [vmem:[%s1498_s30 + $0xa8] sm:$0xff]  ;;  %v248_v46 = vld [vmem:[%s1498_s30 + $0xb0] sm:$0xff]  ;;  %v249_v47 = vld [vmem:[%s1498_s30 + $0xb8] sm:$0xff] }
  0x20   : > { %1251 = vmatprep.subr.bf16.mxu0 %v1250_v14  ;;  %1278 = vmatprep.subr.bf16.mxu1 %v1258_v24  ;;  %v250_v48 = vld [vmem:[%s1498_s30 + $0xc0] sm:$0xff]  ;;  %v251_v49 = vld [vmem:[%s1498_s30 + $0xc8] sm:$0xff]  ;;  %v252_v50 = vld [vmem:[%s1498_s30 + $0xd0] sm:$0xff] }
  0x21   : > { %v253_v51 = vld [vmem:[%s1498_s30 + $0xd8] sm:$0xff]  ;;  %v254_v52 = vld [vmem:[%s1498_s30 + $0xe0] sm:$0xff]  ;;  %v255_v53 = vld [vmem:[%s1498_s30 + $0xe8] sm:$0xff] }
  0x22   : > { %1117 = vmatmul.mubr.msk.f32.gmra.mrb[4].mxu0 %vm267_vm0, %v231_v20  ;;  %1286 = vmatpush3.bf16.msra.mxu1 %v1258_v24  ;;  %v256_v54 = vld [vmem:[%s1498_s30 + $0xf0] sm:$0xff]  ;;  %v257_v55 = vld [vmem:[%s1498_s30 + $0xf8] sm:$0xff]  ;;  %s216_s30 = sand.u32 1, %s1385_s19  }
  0x23   : > { %1119 = vmatprep.mubr.msk.f32.mxu0 %vm267_vm0, %v232_v23  ;;  %1253 = vmatpush3.bf16.msra.mxu0 %v1250_v14  ;;  %s981_s17 = sshll.u32 %s216_s30, 8  ;;  %s1722_s22 = scalar_lea.sflag [#allocation3], %s216_s30 }
  0x24   : > { %1255 = vmatprep.subr.bf16.mxu0 %v1254_v19  ;;  %1279 = vmatprep.subr.bf16.mxu1 %v1262_v29  ;;  %s1647_s26 = scalar_lea.vmem [#allocation2], %s981_s17 }
  0x25   : > { %s915_s7 = sshll.u32 %s1647_s26, 4  ;;  %s1715_s7 = int_to_ptr.vmem [resolvable:$true] %s915_s7 }
  0x26   : > { %1120 = vmatmul.mubr.msk.f32.gmra.mrb[6].mxu0 %vm267_vm0, %v233_v25  ;;  %1287 = vmatpush3.bf16.msra.mxu1 %v1262_v29  ;;  %s1331_s11 = scalar_lea.vmem %s1715_s7, 4096  ;;  %p1338_p0 = scmp.lt.s32.totalorder %s1715_s7, %s1336_s13 }
  0x27   : > { %1122 = vmatprep.mubr.msk.f32.mxu0 %vm267_vm0, %v234_v28  ;;  %1257 = vmatpush3.bf16.msra.mxu0 %v1254_v19  ;;  %p1332_p11 = scmp.ne.s32.totalorder %s1715_s7, %s1331_s11  ;;  %p1339_p1 = scmp.lt.s32.totalorder %s1337_s14, %s1331_s11 }
  0x28   : > { %1259 = vmatprep.subr.bf16.mxu0 %v1258_v24  ;;  %1280 = vmatprep.subr.bf16.mxu1 %v1266_v34 }
  0x29   : > { %p1333_p12 = pnand %p1332_p11, %p1466_p5  ;;  %p1340_p2 = por %p1339_p1, %p1338_p0 }
  0x2a   : > { %1123 = vmatmul.mubr.msk.f32.gmra.mrb[8].mxu0 %vm267_vm0, %v235_v30  ;;  %1288 = vmatpush3.bf16.msra.mxu1 %v1266_v34 }
  0x2b   : > { %1125 = vmatprep.mubr.msk.f32.mxu0 %vm267_vm0, %v236_v33  ;;  %1261 = vmatpush3.bf16.msra.mxu0 %v1258_v24  ;;  %p1334_p13 = pneg %p1333_p12 }
  0x2c   : > { %1263 = vmatprep.subr.bf16.mxu0 %v1262_v29  ;;  %1281 = vmatprep.subr.bf16.mxu1 %v1270_v58 }
  0x2d   : > { %p1341_p3 = pnand %p1340_p2, %p1334_p13 }
  0x2e   : > { %1126 = vmatmul.mubr.msk.f32.gmra.mrb[10].mxu0 %vm267_vm0, %v237_v35  ;;  %1289 = vmatpush3.bf16.msra.mxu1 %v1270_v58 }
  0x2f   : > { %1128 = vmatprep.mubr.msk.f32.mxu0 %vm267_vm0, %v238_v36  ;;  %1265 = vmatpush3.bf16.msra.mxu0 %v1262_v29 }
  0x30   : > { %1267 = vmatprep.subr.bf16.mxu0 %v1266_v34 }
  0x32   : > { %1129 = vmatmul.mubr.msk.f32.gmra.mrb[12].mxu0 %vm267_vm0, %v239_v37 }
  0x33   : > { %1131 = vmatprep.mubr.msk.f32.mxu0 %vm267_vm0, %v240_v38  ;;  %1269 = vmatpush3.bf16.msra.mxu0 %v1266_v34 }
  0x34   : > { %1271 = vmatprep.subr.bf16.mxu0 %v1270_v58 }
  0x36   : > { %1132 = vmatmul.mubr.msk.f32.gmra.mrb[14].mxu0 %vm267_vm0, %v241_v39 }
  0x37   : > { %1134 = vmatprep.mubr.msk.f32.mxu0 %vm267_vm0, %v242_v40  ;;  %1273 = vmatpush3.bf16.msra.mxu0 %v1270_v58 }
  0x3a   : > { %1135 = vmatmul.mubr.msk.f32.gmra.mrb[16].mxu0 %vm267_vm0, %v243_v41 }
  0x3b   : > { %1137 = vmatprep.mubr.msk.f32.mxu0 %vm267_vm0, %v244_v42 }
  0x3e   : > { %1138 = vmatmul.mubr.msk.f32.gmra.mrb[18].mxu0 %vm267_vm0, %v245_v43 }
  0x3f   : > { %1140 = vmatprep.mubr.msk.f32.mxu0 %vm267_vm0, %v246_v44 }
  0x42   : > { %1141 = vmatmul.mubr.msk.f32.gmra.mrb[20].mxu0 %vm267_vm0, %v247_v45 }
  0x43   : > { %1143 = vmatprep.mubr.msk.f32.mxu0 %vm267_vm0, %v248_v46 }
  0x46   : > { %1144 = vmatmul.mubr.msk.f32.gmra.mrb[22].mxu0 %vm267_vm0, %v249_v47 }
  0x47   : > { %1146 = vmatprep.mubr.msk.f32.mxu0 %vm267_vm0, %v250_v48 }
  0x4a   : > { %1147 = vmatmul.mubr.msk.f32.gmra.mrb[24].mxu0 %vm267_vm0, %v251_v49 }
  0x4b   : > { %1149 = vmatprep.mubr.msk.f32.mxu0 %vm267_vm0, %v252_v50 }
  0x4e   : > { %1150 = vmatmul.mubr.msk.f32.gmra.mrb[26].mxu0 %vm267_vm0, %v253_v51 }
  0x4f   : > { %1152 = vmatprep.mubr.msk.f32.mxu0 %vm267_vm0, %v254_v52 }
  0x52   : > { %1153 = vmatmul.mubr.msk.f32.gmra.mrb[28].mxu0 %vm267_vm0, %v255_v53 }
  0x53   : > { %1155 = vmatprep.mubr.msk.f32.mxu0 %vm267_vm0, %v256_v54 }
  0x56   : > { %1156 = vmatmul.mubr.msk.f32.gmra.mrb[30].mxu0 %vm267_vm0, %v257_v55 }
  0xed   : > { %v1112_v60 = vpop.f32.mrb[0].mxu0 }
  0xee   : > { %v436_v61 = vadd.f32 %v1112_v60, %v1603_v59  ;;  %v430_v62 = vpop.f32.mrb[1].mxu0 }
  0xef   : > { %v431_v63 = vadd.f32 %v1603_v59, %v430_v62 }
  0xf0   : > { %v590_v2 = vmax.f32 %v436_v61, 0.0 }
  0xf1   : > { %v589_v0 = vmax.f32 %v431_v63, 0.0  ;;  %v1115_v1 = vpop.f32.mrb[2].mxu0 }
  0xf2   : > { %v446_v3 = vadd.f32 %v1115_v1, %v1603_v59  ;;  %v440_v4 = vpop.f32.mrb[3].mxu0 }
  0xf3   : > { %v441_v5 = vadd.f32 %v1603_v59, %v440_v4  ;;  %1190 = vmatprep.mubr.f32.mxu0 %v589_v0 }
  0xf4   : > { %1191 = vmatmul.mubr.f32.vlgmr.msra.gmra.mrb[32].mxu0 %v590_v2  ;;  %v592_v8 = vmax.f32 %v446_v3, 0.0 }
  0xf5   : > { %v591_v6 = vmax.f32 %v441_v5, 0.0  ;;  %v1118_v7 = vpop.f32.mrb[4].mxu0 }
  0xf6   : > { %v456_v9 = vadd.f32 %v1118_v7, %v1603_v59  ;;  %v450_v10 = vpop.f32.mrb[5].mxu0 }
  0xf7   : > { %v451_v11 = vadd.f32 %v1603_v59, %v450_v10  ;;  %1193 = vmatprep.mubr.f32.mxu0 %v591_v6 }
  0xf8   : > { %1194 = vmatmul.mubr.f32.gmra.mrb[34].mxu0 %v592_v8  ;;  %v594_v14 = vmax.f32 %v456_v9, 0.0 }
  0xf9   : > { %v593_v12 = vmax.f32 %v451_v11, 0.0  ;;  %v1121_v13 = vpop.f32.mrb[6].mxu0 }
  0xfa   : > { %v466_v15 = vadd.f32 %v1121_v13, %v1603_v59  ;;  %v460_v16 = vpop.f32.mrb[7].mxu0 }
  0xfb   : > { %1196 = vmatprep.mubr.f32.mxu0 %v593_v12  ;;  %v461_v17 = vadd.f32 %v1603_v59, %v460_v16 }
  0xfc   : > { %1197 = vmatmul.mubr.f32.gmra.mrb[36].mxu0 %v594_v14  ;;  %v596_v20 = vmax.f32 %v466_v15, 0.0 }
  0xfd   : > { %v1124_v18 = vpop.f32.mrb[8].mxu0  ;;  %v595_v19 = vmax.f32 %v461_v17, 0.0 }
  0xfe   : > { %v476_v21 = vadd.f32 %v1124_v18, %v1603_v59  ;;  %v470_v22 = vpop.f32.mrb[9].mxu0 }
  0xff   : > { %v471_v23 = vadd.f32 %v1603_v59, %v470_v22  ;;  %1199 = vmatprep.mubr.f32.mxu1 %v595_v19 }
 0x100   : > { %1200 = vmatmul.mubr.f32.vlgmr.msra.gmra.mrb[0].mxu1 %v596_v20  ;;  %v598_v26 = vmax.f32 %v476_v21, 0.0 }
 0x101   : > { %v597_v24 = vmax.f32 %v471_v23, 0.0  ;;  %v1127_v25 = vpop.f32.mrb[10].mxu0 }
 0x102   : > { %v486_v27 = vadd.f32 %v1127_v25, %v1603_v59  ;;  %v480_v28 = vpop.f32.mrb[11].mxu0 }
 0x103   : > { %v481_v29 = vadd.f32 %v1603_v59, %v480_v28  ;;  %1202 = vmatprep.mubr.f32.mxu1 %v597_v24 }
 0x104   : > { %1203 = vmatmul.mubr.f32.gmra.mrb[2].mxu1 %v598_v26  ;;  %v600_v32 = vmax.f32 %v486_v27, 0.0 }
 0x105   : > { %v599_v30 = vmax.f32 %v481_v29, 0.0  ;;  %v1130_v31 = vpop.f32.mrb[12].mxu0  ;;  %v1643_v29 = vld [vmem:[%s1767_s4] ss:$0 sm:$0xff] }
 0x106   : > { %v496_v33 = vadd.f32 %v1130_v31, %v1603_v59  ;;  %v490_v34 = vpop.f32.mrb[13].mxu0 }
 0x107   : > { %v491_v35 = vadd.f32 %v1603_v59, %v490_v34  ;;  %1205 = vmatprep.mubr.f32.mxu1 %v599_v30 }
 0x108   : > { %1206 = vmatmul.mubr.f32.gmra.mrb[4].mxu1 %v600_v32  ;;  %v602_v38 = vmax.f32 %v496_v33, 0.0 }
 0x109   : > { %v601_v36 = vmax.f32 %v491_v35, 0.0  ;;  %v1133_v37 = vpop.f32.mrb[14].mxu0 }
 0x10a   : > { %v506_v39 = vadd.f32 %v1133_v37, %v1603_v59  ;;  %v500_v40 = vpop.f32.mrb[15].mxu0 }
 0x10b   : > { %v501_v41 = vadd.f32 %v1603_v59, %v500_v40  ;;  %1208 = vmatprep.mubr.f32.mxu1 %v601_v36 }
 0x10c   : > { %1209 = vmatmul.mubr.f32.gmra.mrb[6].mxu1 %v602_v38  ;;  %v604_v44 = vmax.f32 %v506_v39, 0.0 }
 0x10d   : > { %v603_v42 = vmax.f32 %v501_v41, 0.0  ;;  %v1136_v43 = vpop.f32.mrb[16].mxu0 }
 0x10e   : > { %v516_v45 = vadd.f32 %v1136_v43, %v1603_v59  ;;  %v510_v46 = vpop.f32.mrb[17].mxu0 }
 0x10f   : > { %v511_v47 = vadd.f32 %v1603_v59, %v510_v46  ;;  %1211 = vmatprep.mubr.f32.mxu1 %v603_v42 }
 0x110   : > { %1212 = vmatmul.mubr.f32.gmra.mrb[8].mxu1 %v604_v44  ;;  %v606_v50 = vmax.f32 %v516_v45, 0.0 }
 0x111   : > { %v605_v48 = vmax.f32 %v511_v47, 0.0  ;;  %v1139_v49 = vpop.f32.mrb[18].mxu0 }
 0x112   : > { %v526_v51 = vadd.f32 %v1139_v49, %v1603_v59  ;;  %v520_v52 = vpop.f32.mrb[19].mxu0 }
 0x113   : > { %v521_v53 = vadd.f32 %v1603_v59, %v520_v52  ;;  %1214 = vmatprep.mubr.f32.mxu1 %v605_v48 }
 0x114   : > { %1215 = vmatmul.mubr.f32.gmra.mrb[10].mxu1 %v606_v50  ;;  %v608_v56 = vmax.f32 %v526_v51, 0.0 }
 0x115   : > { %v607_v54 = vmax.f32 %v521_v53, 0.0  ;;  %v1142_v55 = vpop.f32.mrb[20].mxu0 }
 0x116   : > { %v536_v57 = vadd.f32 %v1142_v55, %v1603_v59  ;;  %v530_v58 = vpop.f32.mrb[21].mxu0 }
 0x117   : > { %v531_v60 = vadd.f32 %v1603_v59, %v530_v58  ;;  %1217 = vmatprep.mubr.f32.mxu1 %v607_v54 }
 0x118   : > { %1218 = vmatmul.mubr.f32.gmra.mrb[12].mxu1 %v608_v56  ;;  %v610_v63 = vmax.f32 %v536_v57, 0.0 }
 0x119   : > { %v609_v61 = vmax.f32 %v531_v60, 0.0  ;;  %v1145_v62 = vpop.f32.mrb[22].mxu0 }
 0x11a   : > { %v546_v0 = vadd.f32 %v1145_v62, %v1603_v59  ;;  %v540_v1 = vpop.f32.mrb[23].mxu0 }
 0x11b   : > { %v541_v2 = vadd.f32 %v1603_v59, %v540_v1  ;;  %1220 = vmatprep.mubr.f32.mxu1 %v609_v61 }
 0x11c   : > { %1221 = vmatmul.mubr.f32.gmra.mrb[14].mxu1 %v610_v63  ;;  %v612_v5 = vmax.f32 %v546_v0, 0.0 }
 0x11d   : > { %v611_v3 = vmax.f32 %v541_v2, 0.0  ;;  %v1148_v4 = vpop.f32.mrb[24].mxu0 }
 0x11e   : > { %v556_v6 = vadd.f32 %v1148_v4, %v1603_v59  ;;  %v550_v7 = vpop.f32.mrb[25].mxu0 }
 0x11f   : > { %v551_v8 = vadd.f32 %v1603_v59, %v550_v7  ;;  %1223 = vmatprep.mubr.f32.mxu1 %v611_v3 }
 0x120   : > { %1224 = vmatmul.mubr.f32.gmra.mrb[16].mxu1 %v612_v5  ;;  %v614_v11 = vmax.f32 %v556_v6, 0.0 }
 0x121   : > { %v613_v9 = vmax.f32 %v551_v8, 0.0  ;;  %v1151_v10 = vpop.f32.mrb[26].mxu0 }
 0x122   : > { %v566_v12 = vadd.f32 %v1151_v10, %v1603_v59  ;;  %v560_v13 = vpop.f32.mrb[27].mxu0 }
 0x123   : > { %v561_v14 = vadd.f32 %v1603_v59, %v560_v13  ;;  %1226 = vmatprep.mubr.f32.mxu1 %v613_v9 }
 0x124   : > { %1227 = vmatmul.mubr.f32.gmra.mrb[18].mxu1 %v614_v11  ;;  %v616_v17 = vmax.f32 %v566_v12, 0.0 }
 0x125   : > { %v615_v15 = vmax.f32 %v561_v14, 0.0  ;;  %v1154_v16 = vpop.f32.mrb[28].mxu0 }
 0x126   : > { %v576_v18 = vadd.f32 %v1154_v16, %v1603_v59  ;;  %v570_v19 = vpop.f32.mrb[29].mxu0 }
 0x127   : > { %v571_v20 = vadd.f32 %v1603_v59, %v570_v19  ;;  %1229 = vmatprep.mubr.f32.mxu1 %v615_v15 }
 0x128   : > { %1230 = vmatmul.mubr.f32.gmra.mrb[20].mxu1 %v616_v17  ;;  %v618_v23 = vmax.f32 %v576_v18, 0.0 }
 0x129   : > { %v617_v21 = vmax.f32 %v571_v20, 0.0  ;;  %v1157_v22 = vpop.f32.mrb[30].mxu0 }
 0x12a   : > { %v586_v24 = vadd.f32 %v1157_v22, %v1603_v59  ;;  %v580_v25 = vpop.f32.mrb[31].mxu0 }
 0x12b   : > { %v581_v26 = vadd.f32 %v1603_v59, %v580_v25  ;;  %1232 = vmatprep.mubr.f32.mxu1 %v617_v21 }
 0x12c   : > { %1233 = vmatmul.mubr.f32.gmra.mrb[22].mxu1 %v618_v23  ;;  %v620_v28 = vmax.f32 %v586_v24, 0.0 }
 0x12d   : > { %v619_v27 = vmax.f32 %v581_v26, 0.0 }
 0x12f   : > { %1235 = vmatprep.mubr.f32.mxu1 %v619_v27 }
 0x130   : > { %1236 = vmatmul.mubr.f32.gmra.mrb[24].mxu1 %v620_v28 }
 0x1c7   : > { %v1192_v30 = vpop.f32.mrb[32].mxu0 }
 0x1c8   : > { %v716_v31 = vadd.f32 %v1192_v30, %v1643_v29  ;;  %v710_v32 = vpop.f32.mrb[33].mxu0 }
 0x1c9   : > { %v711_v59 = vadd.f32 %v1643_v29, %v710_v32 }
 0x1ca   : > { %870 = vst [vmem:[%s1647_s26 + $0x8] sm:$0xff] %v716_v31 }
 0x1cb   : > { %869 = vst [vmem:[%s1647_s26] sm:$0xff] %v711_v59  ;;  %v1195_v33 = vpop.f32.mrb[34].mxu0 }
 0x1cc   : > { %v726_v34 = vadd.f32 %v1195_v33, %v1643_v29  ;;  %v720_v35 = vpop.f32.mrb[35].mxu0 }
 0x1cd   : > { %v721_v36 = vadd.f32 %v1643_v29, %v720_v35 }
 0x1ce   : > { %872 = vst [vmem:[%s1647_s26 + $0x18] sm:$0xff] %v726_v34 }
 0x1cf   : > { %871 = vst [vmem:[%s1647_s26 + $0x10] sm:$0xff] %v721_v36  ;;  %v1198_v37 = vpop.f32.mrb[36].mxu0 }
 0x1d0   : > { %v736_v38 = vadd.f32 %v1198_v37, %v1643_v29  ;;  %v730_v39 = vpop.f32.mrb[37].mxu0 }
 0x1d1   : > { %v731_v40 = vadd.f32 %v1643_v29, %v730_v39 }
 0x1d2   : > { %874 = vst [vmem:[%s1647_s26 + $0x28] sm:$0xff] %v736_v38 }
 0x1d3   : > { %873 = vst [vmem:[%s1647_s26 + $0x20] sm:$0xff] %v731_v40  ;;  %v1201_v41 = vpop.f32.mrb[0].mxu1 }
 0x1d4   : > { %v746_v42 = vadd.f32 %v1201_v41, %v1643_v29  ;;  %v740_v43 = vpop.f32.mrb[1].mxu1 }
 0x1d5   : > { %v741_v44 = vadd.f32 %v1643_v29, %v740_v43 }
 0x1d6   : > { %876 = vst [vmem:[%s1647_s26 + $0x38] sm:$0xff] %v746_v42 }
 0x1d7   : > { %875 = vst [vmem:[%s1647_s26 + $0x30] sm:$0xff] %v741_v44  ;;  %v1204_v45 = vpop.f32.mrb[2].mxu1 }
 0x1d8   : > { %v756_v46 = vadd.f32 %v1204_v45, %v1643_v29  ;;  %v750_v47 = vpop.f32.mrb[3].mxu1 }
 0x1d9   : > { %v751_v48 = vadd.f32 %v1643_v29, %v750_v47 }
 0x1da   : > { %878 = vst [vmem:[%s1647_s26 + $0x48] sm:$0xff] %v756_v46 }
 0x1db   : > { %877 = vst [vmem:[%s1647_s26 + $0x40] sm:$0xff] %v751_v48  ;;  %v1207_v49 = vpop.f32.mrb[4].mxu1 }
 0x1dc   : > { %v766_v50 = vadd.f32 %v1207_v49, %v1643_v29  ;;  %v760_v51 = vpop.f32.mrb[5].mxu1 }
 0x1dd   : > { %v761_v52 = vadd.f32 %v1643_v29, %v760_v51 }
 0x1de   : > { %880 = vst [vmem:[%s1647_s26 + $0x58] sm:$0xff] %v766_v50 }
 0x1df   : > { %879 = vst [vmem:[%s1647_s26 + $0x50] sm:$0xff] %v761_v52  ;;  %v1210_v53 = vpop.f32.mrb[6].mxu1 }
 0x1e0   : > { %v776_v54 = vadd.f32 %v1210_v53, %v1643_v29  ;;  %v770_v55 = vpop.f32.mrb[7].mxu1 }
 0x1e1   : > { %v771_v56 = vadd.f32 %v1643_v29, %v770_v55 }
 0x1e2   : > { %882 = vst [vmem:[%s1647_s26 + $0x68] sm:$0xff] %v776_v54 }
 0x1e3   : > { %881 = vst [vmem:[%s1647_s26 + $0x60] sm:$0xff] %v771_v56  ;;  %v1213_v57 = vpop.f32.mrb[8].mxu1 }
 0x1e4   : > { %v786_v58 = vadd.f32 %v1213_v57, %v1643_v29  ;;  %v780_v60 = vpop.f32.mrb[9].mxu1 }
 0x1e5   : > { %v781_v61 = vadd.f32 %v1643_v29, %v780_v60 }
 0x1e6   : > { %884 = vst [vmem:[%s1647_s26 + $0x78] sm:$0xff] %v786_v58 }
 0x1e7   : > { %883 = vst [vmem:[%s1647_s26 + $0x70] sm:$0xff] %v781_v61  ;;  %v1216_v62 = vpop.f32.mrb[10].mxu1 }
 0x1e8   : > { %v796_v63 = vadd.f32 %v1216_v62, %v1643_v29  ;;  %v790_v0 = vpop.f32.mrb[11].mxu1 }
 0x1e9   : > { %v791_v1 = vadd.f32 %v1643_v29, %v790_v0 }
 0x1ea   : > { %886 = vst [vmem:[%s1647_s26 + $0x88] sm:$0xff] %v796_v63 }
 0x1eb   : > { %885 = vst [vmem:[%s1647_s26 + $0x80] sm:$0xff] %v791_v1  ;;  %v1219_v2 = vpop.f32.mrb[12].mxu1 }
 0x1ec   : > { %v806_v3 = vadd.f32 %v1219_v2, %v1643_v29  ;;  %v800_v4 = vpop.f32.mrb[13].mxu1 }
 0x1ed   : > { %v801_v5 = vadd.f32 %v1643_v29, %v800_v4 }
 0x1ee   : > { %888 = vst [vmem:[%s1647_s26 + $0x98] sm:$0xff] %v806_v3 }
 0x1ef   : > { %887 = vst [vmem:[%s1647_s26 + $0x90] sm:$0xff] %v801_v5  ;;  %v1222_v6 = vpop.f32.mrb[14].mxu1 }
 0x1f0   : > { %v816_v7 = vadd.f32 %v1222_v6, %v1643_v29  ;;  %v810_v8 = vpop.f32.mrb[15].mxu1 }
 0x1f1   : > { %v811_v9 = vadd.f32 %v1643_v29, %v810_v8 }
 0x1f2   : > { %890 = vst [vmem:[%s1647_s26 + $0xa8] sm:$0xff] %v816_v7 }
 0x1f3   : > { %889 = vst [vmem:[%s1647_s26 + $0xa0] sm:$0xff] %v811_v9  ;;  %v1225_v10 = vpop.f32.mrb[16].mxu1 }
 0x1f4   : > { %v826_v11 = vadd.f32 %v1225_v10, %v1643_v29  ;;  %v820_v12 = vpop.f32.mrb[17].mxu1 }
 0x1f5   : > { %v821_v13 = vadd.f32 %v1643_v29, %v820_v12 }
 0x1f6   : > { %892 = vst [vmem:[%s1647_s26 + $0xb8] sm:$0xff] %v826_v11 }
 0x1f7   : > { %891 = vst [vmem:[%s1647_s26 + $0xb0] sm:$0xff] %v821_v13  ;;  %v1228_v14 = vpop.f32.mrb[18].mxu1 }
 0x1f8   : > { %v836_v15 = vadd.f32 %v1228_v14, %v1643_v29  ;;  %v830_v16 = vpop.f32.mrb[19].mxu1 }
 0x1f9   : > { %v831_v17 = vadd.f32 %v1643_v29, %v830_v16 }
 0x1fa   : > { %894 = vst [vmem:[%s1647_s26 + $0xc8] sm:$0xff] %v836_v15 }
 0x1fb   : > { %893 = vst [vmem:[%s1647_s26 + $0xc0] sm:$0xff] %v831_v17  ;;  %v1231_v18 = vpop.f32.mrb[20].mxu1 }
 0x1fc   : > { %v846_v19 = vadd.f32 %v1231_v18, %v1643_v29  ;;  %v840_v20 = vpop.f32.mrb[21].mxu1 }
 0x1fd   : > { %v841_v21 = vadd.f32 %v1643_v29, %v840_v20 }
 0x1fe   : > { %896 = vst [vmem:[%s1647_s26 + $0xd8] sm:$0xff] %v846_v19 }
 0x1ff   : > { %895 = vst [vmem:[%s1647_s26 + $0xd0] sm:$0xff] %v841_v21  ;;  %v1234_v22 = vpop.f32.mrb[22].mxu1 }
 0x200   : > { %v856_v23 = vadd.f32 %v1234_v22, %v1643_v29  ;;  %v850_v24 = vpop.f32.mrb[23].mxu1 }
 0x201   : > { %v851_v25 = vadd.f32 %v1643_v29, %v850_v24 }
 0x202   : > { %898 = vst [vmem:[%s1647_s26 + $0xe8] sm:$0xff] %v856_v23 }
 0x203   : > { %897 = vst [vmem:[%s1647_s26 + $0xe0] sm:$0xff] %v851_v25  ;;  %v1237_v26 = vpop.f32.mrb[24].mxu1 }
 0x204   : > { %v866_v27 = vadd.f32 %v1237_v26, %v1643_v29  ;;  %v860_v28 = vpop.f32.mrb[25].mxu1 }
 0x205   : > { %v861_v30 = vadd.f32 %v1643_v29, %v860_v28 }
 0x206   : > { %900 = vst [vmem:[%s1647_s26 + $0xf8] sm:$0xff] %v866_v27 }
 0x207   : > { %899 = vst [vmem:[%s1647_s26 + $0xf0] sm:$0xff] %v861_v30 }
 0x208   : > { %1344 = shalt.err (!%p1341_p3)
}
 0x209   : > { %s1345_s15 = scalar_lea.hbm %s1713_s9, 4096  ;;  %s1349_s17 = scalar_lea.hbm %s1768_s5, 16384 }
 0x20a   : > { %p1346_p4 = scmp.ne.s32.totalorder %s1713_s9, %s1345_s15  ;;  %p1350_p9 = scmp.lt.u32.totalorder %s1713_s9, %s1768_s5 }
 0x20b   : > { %p1351_p10 = scmp.lt.u32.totalorder %s1349_s17, %s1345_s15  ;;  %p1353_p12 = scmp.lt.u32.totalorder %s1345_s15, %s1713_s9 }
 0x20c   : > { %p1347_p7 = pnand %p1346_p4, %p1466_p5 }
 0x20d   : > { %p1352_p11 = por %p1351_p10, %p1350_p9 }
 0x20e   : > { %p1348_p8 = pneg %p1347_p7 }
 0x20f   : > { %p1354_p13 = por %p1353_p12, %p1352_p11 }
 0x211   : > { %p1355_p0 = pnand %p1354_p13, %p1348_p8 }
 0x213   : > { %1358 = shalt.err (!%p1355_p0)
}
 0x214   : > { %s1396_s26 = smov 128   ;;  %s1397_s6 = smov 8  }
 0x215   : > { %1290 = dma.vmem_to_hbm [thread:$0]  (%p1466_p5), %s1715_s7, 4096, %s1713_s9, %s1722_s22, %s1396_s26, %s1396_s26, %s1397_s6  }
 0x216 PF: > { %p1296_p1 = scmp.ge.s32.totalorder %s1393_s21, 2  ;;  %s930_s8 = sand.u32 1, %s1381_s18  }
 0x217   : > { %s931_s10 = scalar_lea.sflag [#allocation3], %s930_s8 }
 0x218   : > { %p1293_p2 = pnand %p1296_p1, %p1470_p6 }
 0x21a   : > { %1376 = dma.done.wait (!%p1293_p2), %s931_s10, 4096  }
 0x21b   : > { %1378 = vsyncadd (!%p1293_p2), %s931_s10, 4294963200  ;;  %p15_p3 = scmp.ge.s32.totalorder %s1453_s24, 6   ;;  %s1771_s18 = smov %s1385_s19 }
 0x21c   : > { %s1772_s19 = smov %s1389_s20  ;;  %s1773_s20 = smov %s1464_s27 }
 0x21d   : > { %s1774_s21 = smov %s1453_s24  ;;  %17 = sbr.rel (!%p15_p3) target bundleno = 3 (0x3), region = 75 }
 0x224   :  { %936 = vsyncpa [#allocation3], 1 }
 0x225   :  { %938 = vsyncpa [#allocation3 + $0x1], 1 }

</bundles_post_ra>
